<compile_context>
chip_gen: v7x
topology: tpu7x:2x2x1
jax: 0.10.0
libtpu: 0.0.40
codegen_flags: <defaults>
</compile_context>

<pallas_src>
import functools

import jax
import jax.numpy as jnp
from jax.experimental import pallas as pl
from jax.experimental.pallas import tpu as pltpu

_LANE = 128
_SUBLANE = 8
_TILE_BYTES = 4 * 1024 * 1024        # per-tile byte budget (per buffer)
_VMEM_LIMIT = 32 * 1024 * 1024       # explicit scoped-VMEM limit (fits v7x's 64 MiB)
_MIN_PALLAS_ELEMS = _SUBLANE * _LANE  # below this, fused XLA wins (per-call overhead)


def _round_up(x, m):
    return (x + m - 1) // m * m


def _pick_tile_rows(rows, cols, itemsize):
    """Byte-capped row tile; aims for >=4 grid steps so v7x's 2 TCs share work."""
    byte_cap = max((_TILE_BYTES // (cols * itemsize)) // _SUBLANE * _SUBLANE, _SUBLANE)
    target = max(_round_up(pl.cdiv(rows, 4), _SUBLANE), _SUBLANE)
    tile = min(byte_cap, target)
    if tile >= rows:
        return rows  # single full-extent block (always layout-legal)
    return tile


def _return_kernel(scale_ref, x_ref, o_ref):
    # out = low + sigmoid(x)*(high-low)  ==  mid + half_scale * tanh(x/2)   (exact)
    mid = scale_ref[0]          # SMEM scalar
    half = scale_ref[1]         # SMEM scalar
    x = x_ref[...].astype(jnp.float32)
    o_ref[...] = (mid + half * jnp.tanh(0.5 * x)).astype(o_ref.dtype)


@functools.lru_cache(maxsize=None)
def _build_return_call(rows, cols, tile_rows, dtype_name):
    """Cache key is layout-only; mid/half_scale arrive at runtime via SMEM."""
    dtype = jnp.dtype(dtype_name)
    grid = (pl.cdiv(rows, tile_rows),)
    return pl.pallas_call(
        _return_kernel,
        out_shape=jax.ShapeDtypeStruct((rows, cols), dtype),
        grid_spec=pl.GridSpec(
            grid=grid,
            in_specs=[
                # (2,) [mid, half_scale] scalars, whole array in SMEM.
                pl.BlockSpec(memory_space=pltpu.MemorySpace.SMEM),
                pl.BlockSpec((tile_rows, cols), lambda i: (i, 0)),
            ],
            out_specs=pl.BlockSpec((tile_rows, cols), lambda i: (i, 0)),
        ),
        compiler_params=pltpu.CompilerParams(
            # Elementwise streaming loop: shard row tiles across TensorCores
            # (helps v7x megacore; harmless on 1-TC v5e/v6e).
            dimension_semantics=("parallel",),
            vmem_limit_bytes=_VMEM_LIMIT,
        ),
    )


@jax.jit
def _fallback(val, mid, half):
    # Single fused XLA pass for ragged / tiny inputs.
    x = val.astype(jnp.float32)
    return (mid + half * jnp.tanh(0.5 * x)).astype(val.dtype)


def return_forward(val, low, high):
    """out = low + sigmoid(val) * (high - low), any shape / float dtype."""
    val = jnp.asarray(val)
    if not jnp.issubdtype(val.dtype, jnp.floating):
        val = val.astype(jnp.float32)
    low = float(low)
    high = float(high)
    mid = 0.5 * (low + high)
    half = 0.5 * (high - low)

    shape = val.shape
    n = val.size
    cols = shape[-1] if val.ndim >= 1 else 1

    lane_dense = val.ndim >= 1 and cols % _LANE == 0 and n >= _MIN_PALLAS_ELEMS
    if lane_dense:
        rows = n // cols
        x2 = val.reshape(rows, cols)  # free for contiguous row-major inputs
        tile_rows = _pick_tile_rows(rows, cols, x2.dtype.itemsize)
        call = _build_return_call(rows, cols, tile_rows, x2.dtype.name)
        scale = jnp.array([mid, half], dtype=jnp.float32)
        return call(scale, x2).reshape(shape)

    # Ragged last dim or tiny input: one fused elementwise pass, no Pallas.
    return _fallback(val, jnp.float32(mid), jnp.float32(half))


class ReturnPallas:
    """Re-implementation of the PyTorch `Return` module (forward pass on TPU)."""

    def __init__(self, discount_factor):
        assert 0 <= discount_factor < 1
        self.coefficient = 1.0 / (1.0 - discount_factor)
        self.min_reward = float(-1.0)
        self.max_reward = float(1.0)
        self._low = float(self.coefficient * self.min_reward)
        self._high = float(self.coefficient * self.max_reward)

    def __call__(self, val):
        return return_forward(val, self._low, self._high)

    # Host-side bookkeeping; mirrors the PyTorch record()/update() (no kernel).
    # TODO(synk): record() stays a host-side python loop like the original module.
    def record(self, values):
        for v in values:
            v = float(v)
            if v < self.min_reward:
                self.min_reward = v
            elif v > self.max_reward:
                self.max_reward = v

    def update(self):
        self._low = float(self.coefficient * self.min_reward)
        self._high = float(self.coefficient * self.max_reward)


if __name__ == "__main__":
    key = jax.random.PRNGKey(0)
    module = ReturnPallas(discount_factor=0.99)

    def ref_fn(x):
        xf = x.astype(jnp.float32)
        return module._low + jax.nn.sigmoid(xf) * (module._high - module._low)

    # 1) Lane-dense rank-3 input (B, S, D) -> fast Pallas path via free reshape.
    x = jax.random.normal(key, (4, 16, 128), dtype=jnp.float32)
    out = jax.block_until_ready(module(x))
    assert out.shape == x.shape and out.dtype == jnp.float32
    assert jnp.allclose(out, ref_fn(x), atol=1e-2, rtol=1e-4), float(
        jnp.max(jnp.abs(out - ref_fn(x))))

    # 2) bf16 input: kernel streams bf16 I/O, computes in f32 vregs.
    xb = jax.random.normal(jax.random.PRNGKey(1), (16, 256), dtype=jnp.bfloat16)
    outb = jax.block_until_ready(module(xb))
    assert outb.shape == xb.shape and outb.dtype == jnp.bfloat16
    assert jnp.allclose(outb.astype(jnp.float32), ref_fn(xb), atol=1.0, rtol=2e-2)

    # 3) Narrow value head (37, 1): fused XLA fallback path.
    xn = jax.random.normal(jax.random.PRNGKey(2), (37, 1), dtype=jnp.float32)
    outn = jax.block_until_ready(module(xn))
    assert outn.shape == xn.shape
    assert jnp.allclose(outn, ref_fn(xn), atol=1e-2, rtol=1e-4)

    # 4) record()/update() changes low/high: same compiled kernel reused
    #    (SMEM scalars), results track the new parameters.
    module.record([-5.0, 3.0])
    module.update()
    out2 = jax.block_until_ready(module(x))
    assert jnp.allclose(out2, ref_fn(x), atol=5e-2, rtol=1e-3), float(
        jnp.max(jnp.abs(out2 - ref_fn(x))))

    print("KERNEL_OK")
</pallas_src>

<mosaic_0001>
module attributes {stable_mosaic.version = 11 : i64} {
  func.func @_return_kernel(%arg0: i32, %arg1: memref<2xf32, #tpu.memory_space<smem>>, %arg2: memref<16x128xf32, #tpu.memory_space<vmem>>, %arg3: memref<16x128xf32, #tpu.memory_space<vmem>>) attributes {dimension_semantics = [#tpu.dimension_semantics<parallel>], iteration_bounds = array<i64: 4>, scalar_prefetch = 0 : i64, scratch_operands = 0 : i64, tpu.core_type = #tpu.core_type<tc>, window_params = [{transform_indices = @transform_0, window_bounds = array<i64: 2>}, {transform_indices = @transform_1, window_bounds = array<i64: 16, 128>}, {transform_indices = @transform_2, window_bounds = array<i64: 16, 128>}]} {
    %c0 = arith.constant 0 : index
    %0 = memref.load %arg1[%c0] : memref<2xf32, #tpu.memory_space<smem>>
    %c1 = arith.constant 1 : index
    %1 = memref.load %arg1[%c1] : memref<2xf32, #tpu.memory_space<smem>>
    %c0_0 = arith.constant 0 : index
    %c0_1 = arith.constant 0 : index
    %2 = vector.load %arg2[%c0_0, %c0_1] : memref<16x128xf32, #tpu.memory_space<vmem>>, vector<16x128xf32>
    %cst = arith.constant 5.000000e-01 : f32
    %3 = vector.broadcast %cst : f32 to vector<16x128xf32>
    %4 = arith.mulf %3, %2 : vector<16x128xf32>
    %5 = math.tanh %4 : vector<16x128xf32>
    %6 = vector.broadcast %1 : f32 to vector<16x128xf32>
    %7 = arith.mulf %6, %5 : vector<16x128xf32>
    %8 = vector.broadcast %0 : f32 to vector<16x128xf32>
    %9 = arith.addf %8, %7 : vector<16x128xf32>
    %c0_2 = arith.constant 0 : index
    %c0_3 = arith.constant 0 : index
    %10 = vector.load %arg3[%c0_2, %c0_3] : memref<16x128xf32, #tpu.memory_space<vmem>>, vector<16x128xf32>
    tpu.vector_store %arg3[%c0_2, %c0_3], %9 {strides = array<i32>} : memref<16x128xf32, #tpu.memory_space<vmem>>, vector<16x128xf32>,
    return
  }
  func.func @transform_0(%arg0: i32) -> i32 {
    %c0_i32 = arith.constant 0 : i32
    %c0_i32_0 = arith.constant 0 : i32
    return %c0_i32 : i32
  }
  func.func @transform_1(%arg0: i32) -> (i32, i32) {
    %c0_i32 = arith.constant 0 : i32
    %c0_i32_0 = arith.constant 0 : i32
    return %arg0, %c0_i32 : i32, i32
  }
  func.func @transform_2(%arg0: i32) -> (i32, i32) {
    %c0_i32 = arith.constant 0 : i32
    %c0_i32_0 = arith.constant 0 : i32
    return %arg0, %c0_i32 : i32, i32
  }
}

</mosaic_0001>

<bundles_post_ra>
// kernel: tpu_custom_call.1
= control target key start
LH: loop header
LB: loop body
LE: loop exit
PB: predicated region body
PF: predicated region fallthrough
CT: control target
= control target key end

     0   :  { %7 = vsyncpa [#allocation5], 0  ;;  %s700_s0 = inlined_call_operand.hbm [shape: f32[2], index: 0, kind: input, shape index: {}]   ;;  %s701_s1 = inlined_call_operand.hbm [shape: f32[64,128], index: 1, kind: input, shape index: {}]   ;;  %s702_s2 = inlined_call_operand.hbm [shape: f32[64,128], index: 2, kind: output, shape index: {}]  }
   0x1   :  { %8 = vsyncpa [#allocation3], 0 }
   0x2   :  { %10 = vsyncpa [#allocation3 + $0x1], 0 }
   0x3   :  { %11 = vsyncpa [#allocation4], 0 }
   0x4   :  { %13 = vsyncpa [#allocation4 + $0x1], 0  ;;  %s512_s9 = smov 0   ;;  %s514_s10 = smov 0  }
   0x5   :  { %s516_s11 = smov 0   ;;  %s518_s12 = smov 0  }
   0x6 LB: > { %s533_s13 = sadd.s32 4294967295, %s488_s12   ;;  %s291_s14 = sadd.s32 4294967294, %s488_s12   ;;  %s488_s12 = sphi %s518_s12, %s720_s12   ;;  %s484_s11 = sphi %s516_s11, %s719_s11   ;;  %s480_s10 = sphi %s514_s10, %s718_s10   ;;  %s476_s9 = sphi %s512_s9, %s717_s9  }
   0x7   : > { %s537_s15 = sadd.s32 1, %s488_s12   ;;  %s47_s16 = sadd.s32 1, %s484_s11 }
   0x8   : > { %s44_s17 = ssub.s32 %s488_s12, %s537_s15  ;;  %p54_p0 = scmp.ne.s32.totalorder %s484_s11, %s480_s10 }
   0x9   : > { %p45_p1 = scmp.eq.s32.totalorder %s44_s17, 0  ;;  %p55_p2 = scmp.eq.s32.totalorder %s488_s12, 0 }
   0xa   : > { %p60_p3 = scmp.ne.s32.totalorder %s480_s10, %s476_s9  ;;  %p704_p4 = scmp.eq.s32.totalorder %s533_s13, 0 }
   0xb   : > { %s549_s18 = scalar_select %p45_p1, %s484_s11, %s47_s16  }
   0xc   : > { %p551_p5 = por %p55_p2, %p54_p0  ;;  %p557_p6 = por %p704_p4, %p60_p3 }
   0xd   : > { %p84_p7 = scmp.eq.s32.totalorder %s533_s13, 3  ;;  %p90_p8 = scmp.eq.s32.totalorder %s291_s14, 3 }
   0xe   : > { %s707_s20 = scalar_select %p557_p6, 1, 0 }
   0xf   : > { %p292_p9 = scmp.ge.s32.totalorder %s488_s12, 1  ;;  %p97_p10 = scmp.lt.s32.totalorder %s488_s12, 5 }
  0x10   : > { %p564_p11 = por %p84_p7, %p54_p0  ;;  %p568_p12 = por %p90_p8, %p60_p3 }
  0x11   : > { %p572_p13 = pnand %p292_p9, %p97_p10  ;;  %p331_p2 = scmp.lt.s32.totalorder %s488_s12, 4 }
  0x12   : > { %s708_s21 = scalar_select %p564_p11, 1, 0 }
  0x13   : > { %s709_s22 = scalar_select %p568_p12, 1, 0 }
  0x14   : > { %p318_p1 = pneg %p572_p13  ;;  %s119_s24 = sand.u32 1, %s484_s11  }
  0x15   : > { %s308_s25 = sshll.u32 %s488_s12, 8  ;;  %p585_p0 = pnand %p331_p2, %p551_p5 }
  0x16   : > { %p319_p6 = pnand %p318_p1, %p704_p4  ;;  %s295_s27 = sshll.u32 %s119_s24, 4 }
  0x17   : > { %s375_s30 = scalar_lea.hbm %s700_s0, 16 }
  0x18   : > { %p376_p3 = scmp.ne.s32.totalorder %s700_s0, %s375_s30  ;;  %p377_p7 = pneg %p319_p6 }
  0x19   : > { %p382_p10 = scmp.lt.u32.totalorder %s375_s30, %s700_s0 }
  0x1a   : > { %p378_p8 = pnand %p377_p7, %p376_p3 }
  0x1c   : > { %p379_p9 = pneg %p378_p8 }
  0x1e   : > { %p384_p5 = pnand %p382_p10, %p379_p9 }
  0x20   : > { %387 = shalt.err (!%p384_p5)
}
  0x21   : > { %s490_s7 = smov [#allocation2]   ;;  %s604_s19 = scalar_lea.hbm %s701_s1, %s308_s25 }
  0x22   : > { %321 = dma.hbm_to_smem (!%p319_p6), %s700_s0, 16, %s490_s7, [#allocation5]  }
  0x23   : > { %s123_s28 = scalar_lea.vmem [#allocation6], %s295_s27  ;;  %s608_s30 = scalar_lea.sflag [#allocation3], %s119_s24 }
  0x24   : > { %s130_s29 = sshll.u32 %s123_s28, 4  ;;  %s388_s3 = scalar_lea.hbm %s604_s19, 256  ;;  %s606_s29 = int_to_ptr.vmem [resolvable:$true] %s130_s29 }
  0x25   : > { %p389_p1 = scmp.ne.s32.totalorder %s604_s19, %s388_s3  ;;  %p390_p2 = pneg %p585_p0 }
  0x26   : > { %s393_s5 = scalar_lea.hbm %s701_s1, 1024  ;;  %p394_p7 = scmp.lt.u32.totalorder %s604_s19, %s701_s1 }
  0x27   : > { %p391_p6 = pnand %p390_p2, %p389_p1  ;;  %p395_p8 = scmp.lt.u32.totalorder %s393_s5, %s388_s3 }
  0x28   : > { %p397_p10 = scmp.lt.u32.totalorder %s388_s3, %s604_s19 }
  0x29   : > { %p392_p3 = pneg %p391_p6  ;;  %p396_p9 = por %p395_p8, %p394_p7 }
  0x2b   : > { %p398_p5 = por %p397_p10, %p396_p9 }
  0x2d   : > { %p399_p4 = pnand %p398_p5, %p392_p3 }
  0x2f   : > { %402 = shalt.err (!%p399_p4)
}
  0x30   : > { %s403_s24 = scalar_lea.vmem %s606_s29, 256  ;;  %s491_s27 = smov [#allocation6]  }
  0x31   : > { %p404_p1 = scmp.ne.s32.totalorder %s606_s29, %s403_s24  ;;  %s408_s8 = sshll.u32 %s491_s27, 4  ;;  %s409_s8 = int_to_ptr.vmem [resolvable:$false] %s408_s8 }
  0x32   : > { %s410_s14 = scalar_lea.vmem %s409_s8, 512  ;;  %p411_p11 = scmp.lt.s32.totalorder %s606_s29, %s409_s8 }
  0x33   : > { %p406_p6 = pnand %p404_p1, %p390_p2  ;;  %p412_p7 = scmp.lt.s32.totalorder %s410_s14, %s403_s24 }
  0x35   : > { %p407_p12 = pneg %p406_p6  ;;  %p413_p8 = por %p412_p7, %p411_p11 }
  0x37   : > { %p414_p9 = pnand %p413_p8, %p407_p12 }
  0x39   : > { %417 = shalt.err (!%p414_p9)
}
  0x3a   : > { %s492_s16 = smov 128   ;;  %s493_s17 = smov 8  }
  0x3b   : > { %325 = dma.hbm_to_vmem [thread:$0]  (!%p585_p0), %s604_s19, 256, %s606_s29, %s608_s30, %s492_s16, %s492_s16, %s493_s17  }
  0x3c   : > { %142 = sbr.rel (%p572_p13) target bundleno = 108 (0x6c), region = 28  ;;  %p712_p4 = scmp.eq.s32.totalorder (!%p572_p13), %s533_s13, 0 }
  0x43   : > { %463 = dma.done.wait (%p712_p4), [#allocation5], 16   ;;  %p713_p2 = pmov %p712_p4 }
  0x44   : > { %s643_s28 = sand.u32 1, %s480_s10   ;;  %p714_p11 = scmp.ne.s32.totalorder %s707_s20, 0 }
  0x45   : > { %465 = vsyncadd (%p713_p2), [#allocation5], 4294967280  ;;  %s300_s3 = sshll.u32 %s643_s28, 4  ;;  %s149_s25 = scalar_lea.sflag [#allocation3], %s643_s28 }
  0x46   : > { %s152_s4 = scalar_lea.vmem [#allocation6], %s300_s3 }
  0x47   : > { %467 = dma.done.wait (%p714_p11), %s149_s25, 256  }
  0x48   : > { %469 = vsyncadd (%p714_p11), %s149_s25, 4294967040 }
  0x49   : > { %157 = sfence }
  0x4a   : > { %v178_v0 = vld [vmem:[%s152_s4] sm:$0xff]  ;;  %v179_v1 = vld [vmem:[%s152_s4 + $0x8] sm:$0xff]  ;;  %s302_s23 = sld [smem:[#allocation2 + $0x1]]  ;;  %s176_s26 = sld [smem:[#allocation2]] }
  0x4b   : > { %v180_v2 = vmul.f32 0.5, %v178_v0  ;;  %v181_v3 = vmul.f32 0.5, %v179_v1  ;;  %s173_s19 = scalar_lea.vmem [#allocation7], %s300_s3  ;;  %s309_s20 = sshll.u32 %s533_s13, 8 }
  0x4c   : > { %s206_s29 = sshll.u32 %s173_s19, 4  ;;  %s657_s6 = scalar_lea.hbm %s702_s2, %s309_s20  ;;  %s652_s29 = int_to_ptr.vmem [resolvable:$true] %s206_s29 }
  0x4d   : > { %371 = vtanh.f32 %v180_v2  ;;  %s193_s7 = scalar_lea.sflag [#allocation4], %s643_s28  ;;  %s418_s24 = scalar_lea.vmem %s652_s29, 256 }
  0x4e   : > { %373 = vtanh.f32 %v181_v3  ;;  %p419_p12 = scmp.ne.s32.totalorder %s652_s29, %s418_s24  ;;  %p715_p13 = scmp.ne.s32.totalorder %s708_s21, 0 }
  0x4f   : > { %s494_s13 = smov [#allocation7]  }
  0x50   : > { %v184_v4 = vstv %s302_s23  ;;  %v187_v6 = vstv %s176_s26  ;;  %p420_p0 = pnand %p419_p12, %p715_p13  ;;  %s422_s27 = sshll.u32 %s494_s13, 4  ;;  %s423_s27 = int_to_ptr.vmem [resolvable:$false] %s422_s27 }
  0x51   : > { %s424_s8 = scalar_lea.vmem %s423_s27, 512  ;;  %p425_p10 = scmp.lt.s32.totalorder %s652_s29, %s423_s27 }
  0x52   : > { %p421_p3 = pneg %p420_p0  ;;  %p426_p5 = scmp.lt.s32.totalorder %s424_s8, %s418_s24 }
  0x54   : > { %p427_p1 = por %p426_p5, %p425_p10 }
  0x56   : > { %p428_p6 = pnand %p427_p1, %p421_p3 }
  0x57   : > { %v372_v5 = vpop.eup %371 }
  0x58   : > { %v374_v7 = vpop.eup %373  ;;  %v185_v8 = vmul.f32 %v372_v5, %v184_v4 }
  0x59   : > { %v186_v9 = vmul.f32 %v374_v7, %v184_v4 }
  0x5a   : > { %v188_v10 = vadd.f32 %v187_v6, %v185_v8 }
  0x5b   : > { %v189_v11 = vadd.f32 %v187_v6, %v186_v9 }
  0x5c   : > { %190 = vst [vmem:[%s173_s19] sm:$0xff] %v188_v10 }
  0x5d   : > { %191 = vst [vmem:[%s173_s19 + $0x8] sm:$0xff] %v189_v11 }
  0x5e   : > { %431 = shalt.err (!%p428_p6)
}
  0x5f   : > { %s432_s14 = scalar_lea.hbm %s657_s6, 256  ;;  %s436_s3 = scalar_lea.hbm %s702_s2, 1024 }
  0x60   : > { %p433_p7 = scmp.ne.s32.totalorder %s657_s6, %s432_s14  ;;  %p437_p4 = scmp.lt.u32.totalorder %s657_s6, %s702_s2 }
  0x61   : > { %p438_p2 = scmp.lt.u32.totalorder %s436_s3, %s432_s14  ;;  %p440_p12 = scmp.lt.u32.totalorder %s432_s14, %s657_s6 }
  0x62   : > { %p434_p8 = pnand %p433_p7, %p715_p13 }
  0x63   : > { %p439_p11 = por %p438_p2, %p437_p4 }
  0x64   : > { %p435_p9 = pneg %p434_p8 }
  0x65   : > { %p441_p0 = por %p440_p12, %p439_p11 }
  0x67   : > { %p442_p3 = pnand %p441_p0, %p435_p9 }
  0x69   : > { %445 = shalt.err (!%p442_p3)
}
  0x6a   : > { %s495_s23 = smov 128   ;;  %s496_s26 = smov 8  }
  0x6b   : > { %316 = dma.vmem_to_hbm [thread:$0]  (%p715_p13), %s652_s29, 256, %s657_s6, %s193_s7, %s495_s23, %s495_s23, %s496_s26  }
  0x6c PF: > { %p333_p10 = scmp.ge.s32.totalorder %s488_s12, 2  ;;  %s221_s19 = sand.u32 1, %s476_s9  }
  0x6d   : > { %p716_p5 = scmp.ne.s32.totalorder %s709_s22, 0  ;;  %s222_s20 = scalar_lea.sflag [#allocation4], %s221_s19 }
  0x6f   : > { %p327_p1 = pnand %p333_p10, %p716_p5 }
  0x71   : > { %471 = dma.done.wait (!%p327_p1), %s222_s20, 256  }
  0x72   : > { %473 = vsyncadd (!%p327_p1), %s222_s20, 4294967040  ;;  %p16_p6 = scmp.ge.s32.totalorder %s537_s15, 6   ;;  %s717_s9 = smov %s480_s10 }
  0x73   : > { %s718_s10 = smov %s484_s11  ;;  %s719_s11 = smov %s549_s18 }
  0x74   : > { %s720_s12 = smov %s537_s15  ;;  %18 = sbr.rel (!%p16_p6) target bundleno = 6 (0x6), region = 78 }
  0x7b   :  { %227 = vsyncpa [#allocation3], 1 }
  0x7c   :  { %229 = vsyncpa [#allocation3 + $0x1], 1 }
  0x7d   :  { %230 = vsyncpa [#allocation4], 1 }
  0x7e   :  { %232 = vsyncpa [#allocation4 + $0x1], 1 }
  0x7f   :  { %233 = vsyncpa [#allocation5], 1 }
  0x80   :  { %235 = vsyncpa [#allocation5 + $0x1], 1 }

</bundles_post_ra>
